<compile_context>
chip_gen: v7x
topology: tpu7x:2x2x1
jax: 0.10.0
libtpu: 0.0.40
codegen_flags: <defaults>
</compile_context>

<pallas_src>
import jax
import jax.numpy as jnp
from jax.experimental import pallas as pl
from jax.experimental.pallas import tpu as pltpu

BN_EPS = 1e-3  # nn.BatchNorm2d(..., eps=0.001) in the source module


# ----------------------------- Pallas kernels --------------------------------


def _glu_kernel(x_ref, w_ref, b_ref, o_ref):
    # x_ref : (1, C, S)  conv(+folded BN) output; channels on sublanes, spatial on lanes
    # w_ref : (C, C)     GLU Linear weight, PyTorch (out, in) layout (resident)
    # b_ref : (C, 1)     GLU Linear bias (resident)
    # o_ref : (1, C, S)  gated output
    x = x_ref[0].astype(jnp.float32)
    lin = jnp.dot(w_ref[...], x, preferred_element_type=jnp.float32) + b_ref[...]
    o_ref[0] = (lin * jax.nn.sigmoid(x)).astype(o_ref.dtype)


def _glu_pool_kernel(x_ref, w_ref, b_ref, p_ref, o_ref):
    # Same as _glu_kernel, plus a fused width-only AvgPool2d((1,2)) epilogue.
    # The pool is a matmul with a small (S, S//2) pairing matrix so the lane-axis
    # pairing stays on the MXU slot (no strided lane gathers / lane reshapes) and
    # the gated activation never round-trips HBM before pooling.
    x = x_ref[0].astype(jnp.float32)
    lin = jnp.dot(w_ref[...], x, preferred_element_type=jnp.float32) + b_ref[...]
    g = lin * jax.nn.sigmoid(x)
    o_ref[0] = jnp.dot(g, p_ref[...],
                       preferred_element_type=jnp.float32).astype(o_ref.dtype)


# ----------------------------- kernel wrapper ---------------------------------


def _pair_pool_matrix(s):
    """(S, S//2) matrix averaging adjacent lane pairs.

    Valid for AvgPool2d((1,2)) on a row-major H*W flatten with even W: the
    (2j, 2j+1) pairs never cross a row boundary."""
    rows = jnp.arange(s) // 2
    cols = jnp.arange(s // 2)
    return jnp.where(rows[:, None] == cols[None, :], 0.5, 0.0).astype(jnp.float32)


def glu_fused(x, glu_w, glu_b, *, fuse_width_pool=False):
    """GLU (Linear(x) * sigmoid(x)) on an NCHW tensor, optionally fused with a
    width-only (1,2) average pool.  Returns NCHW."""
    N, C, H, W = x.shape
    S = H * W
    x3 = x.reshape(N, C, S)                      # free reshape, spatial on lanes
    w2 = glu_w.astype(jnp.float32)
    b2 = glu_b.astype(jnp.float32).reshape(C, 1)
    elem = x3.dtype.itemsize

    if fuse_width_pool:
        assert W % 2 == 0, "fused (1,2) pool requires even width"
        s_out, w_out = S // 2, W // 2
        pool_mat = _pair_pool_matrix(S)
        kernel = _glu_pool_kernel
        in_specs = [
            pl.BlockSpec((1, C, S), lambda n: (n, 0, 0)),       # x slab
            pl.BlockSpec((C, C), lambda n: (0, 0)),             # GLU weight (resident)
            pl.BlockSpec((C, 1), lambda n: (0, 0)),             # GLU bias
            pl.BlockSpec((S, s_out), lambda n: (0, 0)),         # pool matrix (resident)
        ]
        args = (x3, w2, b2, pool_mat)
        param_bytes = (C * C + C + S * s_out) * 4
    else:
        s_out, w_out = S, W
        kernel = _glu_kernel
        in_specs = [
            pl.BlockSpec((1, C, S), lambda n: (n, 0, 0)),
            pl.BlockSpec((C, C), lambda n: (0, 0)),
            pl.BlockSpec((C, 1), lambda n: (0, 0)),
        ]
        args = (x3, w2, b2)
        param_bytes = (C * C + C) * 4

    # VMEM budget: double-buffered input + output slabs + resident params + headroom.
    need = 2 * C * S * elem + 2 * C * s_out * elem + param_bytes + (2 << 20)
    vmem_limit = int(min(max(need, 16 << 20), 48 << 20))       # 48 MiB cap is v7x-safe

    out3 = pl.pallas_call(
        kernel,
        out_shape=jax.ShapeDtypeStruct((N, C, s_out), x.dtype),
        grid_spec=pltpu.PrefetchScalarGridSpec(
            num_scalar_prefetch=0,
            grid=(N,),                       # whole (C, S) slab per step; N=2 parallel
            in_specs=in_specs,               # steps keep both v7x TensorCores busy
            out_specs=pl.BlockSpec((1, C, s_out), lambda n: (n, 0, 0)),
        ),
        compiler_params=pltpu.CompilerParams(
            dimension_semantics=("parallel",),
            vmem_limit_bytes=vmem_limit,
        ),
    )(*args)

    return out3.reshape(N, C, H, w_out)


# ------------------------------- XLA glue -------------------------------------


def fold_bn_into_conv(conv_w, conv_b, gamma, beta, mean, var, eps=BN_EPS):
    """Fold inference BatchNorm2d into the preceding conv's weights/bias."""
    scale = gamma / jnp.sqrt(var + eps)
    shift = beta - mean * scale
    return conv_w * scale[:, None, None, None], conv_b * scale + shift


def conv2d_same(x, w, b):
    """3x3, stride 1, padding 1 conv (NCHW / OIHW)."""
    y = jax.lax.conv_general_dilated(
        x, w, window_strides=(1, 1), padding=((1, 1), (1, 1)),
        dimension_numbers=("NCHW", "OIHW", "NCHW"))
    return y + b[None, :, None, None]


def avg_pool(x, k):
    """AvgPool2d(kernel=k, stride=k), floor mode (drops remainder)."""
    kh, kw = k
    N, C, H, W = x.shape
    Hc, Wc = (H // kh) * kh, (W // kw) * kw
    x = x[:, :, :Hc, :Wc]
    x = x.reshape(N, C, Hc // kh, kh, Wc // kw, kw)
    return x.mean(axis=(3, 5))


POOLINGS = [(2, 2), (2, 2), (1, 2), (1, 2), (1, 2), (1, 2), (1, 2)]


def cnn_forward(x, params):
    """Full CNN forward: per block conv(BN folded) -> Pallas GLU (+fused (1,2)
    pool for layers 2-6) -> XLA (2,2) pool for layers 0-1.  Dropout = identity."""
    for p, pool in zip(params, POOLINGS):
        w, b = fold_bn_into_conv(p["conv_w"], p["conv_b"], p["gamma"],
                                 p["beta"], p["mean"], p["var"])
        x = conv2d_same(x, w, b)
        fuse = (pool == (1, 2)) and (x.shape[3] % 2 == 0)
        x = glu_fused(x, p["glu_w"], p["glu_b"], fuse_width_pool=fuse)
        if not fuse:
            x = avg_pool(x, pool)
    return x[:, :, :-1, :]


# ------------------------------ pure-JAX reference ----------------------------


def glu_ref(x, w, b):
    lin = jnp.einsum("oc,nchw->nohw", w, x,
                     precision=jax.lax.Precision.HIGHEST) + b[None, :, None, None]
    return lin * jax.nn.sigmoid(x)


def cnn_forward_ref(x, params):
    for p, pool in zip(params, POOLINGS):
        x = conv2d_same(x, p["conv_w"], p["conv_b"])
        scale = p["gamma"] / jnp.sqrt(p["var"] + BN_EPS)
        shift = p["beta"] - p["mean"] * scale
        x = x * scale[None, :, None, None] + shift[None, :, None, None]
        x = glu_ref(x, p["glu_w"], p["glu_b"])
        x = avg_pool(x, pool)
    return x[:, :, :-1, :]


# ------------------------------ parameter init --------------------------------


def init_params(key):
    c_in = [1, 16, 32, 64, 128, 128, 128]
    c_out = [16, 32, 64, 128, 128, 128, 128]
    params = []
    for i in range(7):
        key, k1, k2, k3, k4, k5, k6, k7, k8 = jax.random.split(key, 9)
        fan = c_in[i] * 9
        bc = (3.0 / fan) ** 0.5
        bl = (3.0 / c_out[i]) ** 0.5
        params.append(dict(
            conv_w=jax.random.uniform(k1, (c_out[i], c_in[i], 3, 3),
                                      minval=-bc, maxval=bc, dtype=jnp.float32),
            conv_b=jax.random.uniform(k2, (c_out[i],), minval=-0.05, maxval=0.05,
                                      dtype=jnp.float32),
            glu_w=jax.random.uniform(k3, (c_out[i], c_out[i]),
                                     minval=-bl, maxval=bl, dtype=jnp.float32),
            glu_b=jax.random.uniform(k4, (c_out[i],), minval=-0.05, maxval=0.05,
                                     dtype=jnp.float32),
            gamma=jax.random.uniform(k5, (c_out[i],), minval=0.9, maxval=1.1,
                                     dtype=jnp.float32),
            beta=0.05 * jax.random.normal(k6, (c_out[i],), dtype=jnp.float32),
            mean=0.05 * jax.random.normal(k7, (c_out[i],), dtype=jnp.float32),
            var=jax.random.uniform(k8, (c_out[i],), minval=0.8, maxval=1.2,
                                   dtype=jnp.float32),
        ))
    return params


# ---------------------------------- main ---------------------------------------


if __name__ == "__main__":
    key = jax.random.PRNGKey(0)
    kx, kp, ku = jax.random.split(key, 3)

    # (N, 1, frames, mel); width 128 survives the seven width-halving pools.
    x = jax.random.normal(kx, (2, 1, 16, 128), dtype=jnp.float32)
    params = init_params(kp)

    # Unit check 1: plain GLU kernel (MXU path, C=16, S=2048, no fused pool).
    p0 = params[0]
    w0, b0 = fold_bn_into_conv(p0["conv_w"], p0["conv_b"], p0["gamma"],
                               p0["beta"], p0["mean"], p0["var"])
    x0 = conv2d_same(x, w0, b0)
    y_k = jax.block_until_ready(glu_fused(x0, p0["glu_w"], p0["glu_b"]))
    y_r = glu_ref(x0, p0["glu_w"], p0["glu_b"])
    assert jnp.allclose(y_k, y_r, atol=2e-5, rtol=2e-5)

    # Unit check 2: GLU + fused (1,2)-pool kernel (C=64, H=4, W=32).
    ku1, ku2, ku3 = jax.random.split(ku, 3)
    xt = jax.random.normal(ku1, (2, 64, 4, 32), dtype=jnp.float32)
    wt = 0.1 * jax.random.normal(ku2, (64, 64), dtype=jnp.float32)
    bt = 0.05 * jax.random.normal(ku3, (64,), dtype=jnp.float32)
    y_k = jax.block_until_ready(glu_fused(xt, wt, bt, fuse_width_pool=True))
    y_r = avg_pool(glu_ref(xt, wt, bt), (1, 2))
    assert jnp.allclose(y_k, y_r, atol=2e-5, rtol=2e-5)

    # Full CNN forward (jit so XLA fuses the conv / BN-fold / (2,2)-pool glue).
    fwd = jax.jit(cnn_forward)
    out = jax.block_until_ready(fwd(x, params))
    ref = cnn_forward_ref(x, params)

    assert out.shape == (2, 128, 3, 1), out.shape
    assert jnp.allclose(out, ref, atol=2e-4, rtol=2e-4)

    print("KERNEL_OK")
</pallas_src>

<mosaic_0001>
module attributes {stable_mosaic.version = 11 : i64} {
  func.func @_glu_kernel(%arg0: i32, %arg1: memref<1x16x2048xf32, #tpu.memory_space<vmem>>, %arg2: memref<16x16xf32, #tpu.memory_space<vmem>>, %arg3: memref<16x1xf32, #tpu.memory_space<vmem>>, %arg4: memref<1x16x2048xf32, #tpu.memory_space<vmem>>) attributes {dimension_semantics = [#tpu.dimension_semantics<parallel>], iteration_bounds = array<i64: 2>, scalar_prefetch = 0 : i64, scratch_operands = 0 : i64, tpu.core_type = #tpu.core_type<tc>, window_params = [{transform_indices = @transform_0, window_bounds = array<i64: 1, 16, 2048>}, {pipeline_mode = #tpu.pipeline_mode<synchronous>, transform_indices = @transform_1, window_bounds = array<i64: 16, 16>}, {pipeline_mode = #tpu.pipeline_mode<synchronous>, transform_indices = @transform_2, window_bounds = array<i64: 16, 1>}, {transform_indices = @transform_3, window_bounds = array<i64: 1, 16, 2048>}]} {
    %c0 = arith.constant 0 : index
    %c0_0 = arith.constant 0 : index
    %c0_1 = arith.constant 0 : index
    %0 = vector.load %arg1[%c0, %c0_0, %c0_1] : memref<1x16x2048xf32, #tpu.memory_space<vmem>>, vector<1x16x2048xf32>
    %1 = vector.shape_cast %0 : vector<1x16x2048xf32> to vector<16x2048xf32>
    %c0_2 = arith.constant 0 : index
    %c0_3 = arith.constant 0 : index
    %2 = vector.load %arg2[%c0_2, %c0_3] : memref<16x16xf32, #tpu.memory_space<vmem>>, vector<16x16xf32>
    %cst = arith.constant dense<0.000000e+00> : vector<16x2048xf32>
    %3 = tpu.matmul %2, %1, %cst {dimension_numbers = #tpu.dot_dimension_numbers<[1], [0], [0], [1], [0, 0, 1, 1], [], []>} : vector<16x16xf32>, vector<16x2048xf32>, vector<16x2048xf32> -> vector<16x2048xf32>
    %c0_4 = arith.constant 0 : index
    %c0_5 = arith.constant 0 : index
    %4 = vector.load %arg3[%c0_4, %c0_5] : memref<16x1xf32, #tpu.memory_space<vmem>>, vector<16x1xf32>
    %5 = vector.broadcast %4 : vector<16x1xf32> to vector<16x2048xf32>
    %6 = arith.addf %3, %5 : vector<16x2048xf32>
    %7 = arith.negf %1 : vector<16x2048xf32>
    %8 = math.exp %7 : vector<16x2048xf32>
    %cst_6 = arith.constant 1.000000e+00 : f32
    %9 = vector.broadcast %cst_6 : f32 to vector<16x2048xf32>
    %10 = arith.addf %9, %8 : vector<16x2048xf32>
    %11 = arith.divf %9, %10 : vector<16x2048xf32>
    %12 = arith.mulf %6, %11 : vector<16x2048xf32>
    %c0_7 = arith.constant 0 : index
    %c0_8 = arith.constant 0 : index
    %c0_9 = arith.constant 0 : index
    %13 = vector.load %arg4[%c0_7, %c0_8, %c0_9] : memref<1x16x2048xf32, #tpu.memory_space<vmem>>, vector<1x16x2048xf32>
    %14 = vector.shape_cast %13 : vector<1x16x2048xf32> to vector<16x2048xf32>
    %15 = vector.shape_cast %12 : vector<16x2048xf32> to vector<1x16x2048xf32>
    tpu.vector_store %arg4[%c0_7, %c0_8, %c0_9], %15 {strides = array<i32>} : memref<1x16x2048xf32, #tpu.memory_space<vmem>>, vector<1x16x2048xf32>,
    return
  }
  func.func @transform_0(%arg0: i32) -> (i32, i32, i32) {
    %c0_i32 = arith.constant 0 : i32
    %c0_i32_0 = arith.constant 0 : i32
    %c0_i32_1 = arith.constant 0 : i32
    return %arg0, %c0_i32, %c0_i32_0 : i32, i32, i32
  }
  func.func @transform_1(%arg0: i32) -> (i32, i32) {
    %c0_i32 = arith.constant 0 : i32
    %c0_i32_0 = arith.constant 0 : i32
    %c0_i32_1 = arith.constant 0 : i32
    return %c0_i32, %c0_i32_0 : i32, i32
  }
  func.func @transform_2(%arg0: i32) -> (i32, i32) {
    %c0_i32 = arith.constant 0 : i32
    %c0_i32_0 = arith.constant 0 : i32
    %c0_i32_1 = arith.constant 0 : i32
    return %c0_i32, %c0_i32_0 : i32, i32
  }
  func.func @transform_3(%arg0: i32) -> (i32, i32, i32) {
    %c0_i32 = arith.constant 0 : i32
    %c0_i32_0 = arith.constant 0 : i32
    %c0_i32_1 = arith.constant 0 : i32
    return %arg0, %c0_i32, %c0_i32_0 : i32, i32, i32
  }
}

</mosaic_0001>

<bundles_post_ra>
// kernel: tpu_custom_call.1
= control target key start
LH: loop header
LB: loop body
LE: loop exit
PB: predicated region body
PF: predicated region fallthrough
CT: control target
= control target key end

     0   :  { %8 = vsyncpa [#allocation3], 0  ;;  %s2109_s0 = inlined_call_operand.hbm [shape: f32[2,16,2048], index: 0, kind: input, shape index: {}]   ;;  %s2110_s1 = inlined_call_operand.vmem [shape: f32[16,16], index: 1, kind: input, shape index: {}]   ;;  %s2111_s2 = inlined_call_operand.vmem [shape: f32[16,1], index: 2, kind: input, shape index: {}]   ;;  %s2112_s3 = inlined_call_operand.hbm [shape: f32[2,16,2048], index: 3, kind: output, shape index: {}]  }
   0x1   :  { %10 = vsyncpa [#allocation3 + $0x1], 0 }
   0x2   :  { %11 = vsyncpa [#allocation4], 0 }
   0x3   :  { %13 = vsyncpa [#allocation4 + $0x1], 0  ;;  %s1604_s12 = smov 0   ;;  %s1606_s13 = smov 0  }
   0x4   :  { %s1608_s14 = smov 0   ;;  %s1610_s15 = smov 0  }
   0x5 LB: > { %s1625_s16 = sadd.s32 4294967295, %s1574_s15   ;;  %s1201_s17 = sadd.s32 4294967294, %s1574_s15   ;;  %s1574_s15 = sphi %s1610_s15, %s2125_s15   ;;  %s1570_s14 = sphi %s1608_s14, %s2124_s14   ;;  %s1566_s13 = sphi %s1606_s13, %s2123_s13   ;;  %s1562_s12 = sphi %s1604_s12, %s2122_s12  }
   0x6   : > { %s1629_s18 = sadd.s32 1, %s1574_s15   ;;  %s26_s19 = sadd.s32 1, %s1570_s14 }
   0x7   : > { %s23_s20 = ssub.s32 %s1574_s15, %s1629_s18  ;;  %p33_p0 = scmp.ne.s32.totalorder %s1570_s14, %s1566_s13 }
   0x8   : > { %p24_p1 = scmp.eq.s32.totalorder %s23_s20, 0  ;;  %p34_p2 = scmp.eq.s32.totalorder %s1574_s15, 0 }
   0x9   : > { %p39_p3 = scmp.ne.s32.totalorder %s1566_s13, %s1562_s12  ;;  %p40_p4 = scmp.eq.s32.totalorder %s1625_s16, 0 }
   0xa   : > { %s1641_s21 = scalar_select %p24_p1, %s1570_s14, %s26_s19  }
   0xb   : > { %p1643_p5 = por %p34_p2, %p33_p0  ;;  %p1647_p6 = por %p40_p4, %p39_p3 }
   0xc   : > { %p105_p7 = scmp.eq.s32.totalorder %s1625_s16, 1  ;;  %p111_p8 = scmp.eq.s32.totalorder %s1201_s17, 1 }
   0xd   : > { %p1309_p10 = scmp.lt.s32.totalorder %s1574_s15, 2  ;;  %s137_s26 = sand.u32 1, %s1570_s14  }
   0xe   : > { %p1654_p11 = por %p105_p7, %p33_p0  ;;  %p1658_p12 = por %p111_p8, %p39_p3 }
   0xf   : > { %s1263_s27 = sshll.u32 %s1574_s15, 12  ;;  %s1204_s28 = sshll.u32 %s137_s26, 8 }
  0x10   : > { %s2116_s24 = scalar_select %p1654_p11, 1, 0 }
  0x11   : > { %s2117_s25 = scalar_select %p1658_p12, 1, 0 }
  0x12   : > { %s1667_s4 = scalar_lea.hbm %s2109_s0, %s1263_s27  ;;  %s141_s5 = scalar_lea.vmem [#allocation2], %s1204_s28 }
  0x13   : > { %s148_s6 = sshll.u32 %s141_s5, 4  ;;  %p1671_p13 = pnand %p1309_p10, %p1643_p5  ;;  %s1675_s6 = int_to_ptr.vmem [resolvable:$true] %s148_s6 }
  0x14   : > { %s1677_s8 = scalar_lea.sflag [#allocation3], %s137_s26  ;;  %s1478_s9 = scalar_lea.hbm %s1667_s4, 4096 }
  0x15   : > { %p1479_p0 = scmp.ne.s32.totalorder %s1667_s4, %s1478_s9  ;;  %p1480_p1 = pneg %p1671_p13 }
  0x16   : > { %s1483_s17 = scalar_lea.hbm %s2109_s0, 8192  ;;  %p1484_p4 = scmp.lt.u32.totalorder %s1667_s4, %s2109_s0 }
  0x17   : > { %p1481_p2 = pnand %p1480_p1, %p1479_p0  ;;  %p1485_p5 = scmp.lt.u32.totalorder %s1483_s17, %s1478_s9 }
  0x18   : > { %p1487_p8 = scmp.lt.u32.totalorder %s1478_s9, %s1667_s4 }
  0x19   : > { %p1482_p3 = pneg %p1481_p2  ;;  %p1486_p7 = por %p1485_p5, %p1484_p4 }
  0x1b   : > { %p1488_p10 = por %p1487_p8, %p1486_p7 }
  0x1d   : > { %p1489_p9 = pnand %p1488_p10, %p1482_p3 }
  0x1f   : > { %1492 = shalt.err (!%p1489_p9)
}
  0x20   : > { %s1493_s22 = scalar_lea.vmem %s1675_s6, 4096  ;;  %s1576_s26 = smov [#allocation2]  }
  0x21   : > { %p1494_p0 = scmp.ne.s32.totalorder %s1675_s6, %s1493_s22  ;;  %s1498_s27 = sshll.u32 %s1576_s26, 4  ;;  %s1499_s27 = int_to_ptr.vmem [resolvable:$false] %s1498_s27 }
  0x22   : > { %s1500_s28 = scalar_lea.vmem %s1499_s27, 8192  ;;  %p1501_p11 = scmp.lt.s32.totalorder %s1675_s6, %s1499_s27 }
  0x23   : > { %p1496_p2 = pnand %p1494_p0, %p1480_p1  ;;  %p1502_p4 = scmp.lt.s32.totalorder %s1500_s28, %s1493_s22 }
  0x25   : > { %p1497_p12 = pneg %p1496_p2  ;;  %p1503_p5 = por %p1502_p4, %p1501_p11 }
  0x27   : > { %p1504_p7 = pnand %p1503_p5, %p1497_p12 }
  0x29   : > { %1507 = shalt.err (!%p1504_p7)
}
  0x2a   : > { %s1577_s29 = smov 2048   ;;  %s1578_s30 = smov 128  }
  0x2b   : > { %1304 = dma.hbm_to_vmem [thread:$0]  (!%p1671_p13), %s1667_s4, 4096, %s1675_s6, %s1677_s8, %s1577_s29, %s1577_s29, %s1578_s30  }
  0x2c   : > { %p1207_p9 = scmp.ge.s32.totalorder %s1574_s15, 1  ;;  %p156_p1 = scmp.lt.s32.totalorder %s1574_s15, 3 }
  0x2e   : > { %p157_p3 = pnand %p1207_p9, %p156_p1 }
  0x2f   : > { %s1708_s5 = sand.u32 (!%p157_p3), 1, %s1566_s13  }
  0x30   : > { %160 = sbr.rel (%p157_p3) target bundleno = 325 (0x145), region = 32  ;;  %s1208_s9 = sshll.u32 (!%p157_p3), %s1708_s5, 8 }
  0x31   : > { %s163_s10 = scalar_lea.sflag (!%p157_p3), [#allocation3], %s1708_s5  ;;  %s1714_s11 = scalar_lea.vmem (!%p157_p3), [#allocation2], %s1208_s9 }
  0x37   : > { %1553 = dma.done.wait (%p1647_p6), %s163_s10, 4096  }
  0x38   : > { %1555 = vsyncadd (%p1647_p6), %s163_s10, 4294963200  ;;  %v1579_v0 = vmov 0.0   ;;  %v1580_v1 = vmov 0   ;;  %v1723_v2 = vld [vmem:[%s1714_s11 + $0x8] sm:$0xff]  ;;  %v1729_v4 = vld [vmem:[%s1714_s11 + $0x18] sm:$0xff]  ;;  %vm235_vm0 = vcmask 130048  }
  0x39   : > { %306 = vmatprep.mubr.f32.mxu0 %v1579_v0  ;;  %383 = vmatprep.mubr.f32.mxu1 %v1579_v0  ;;  %v1726_v3 = vld [vmem:[%s1714_s11 + $0x88] sm:$0xff]  ;;  %v1734_v6 = vld [vmem:[%s1714_s11 + $0x98] sm:$0xff]  ;;  %v1737_v7 = vld [vmem:[%s1714_s11] sm:$0xff]  ;;  %v1227_v54 = vmul.f32 -1.442695, %v1723_v2  ;;  %s1986_s22 = scalar_lea.vmem [#allocation5], %s1208_s9 }
  0x3a   : > { %1349 = vset.pattern.permute.xlu0 %v1580_v1  ;;  %v1265_v5 = vpack.c.bf16 %v1726_v3, %v1723_v2  ;;  %v1269_v8 = vpack.c.bf16 %v1734_v6, %v1729_v4  ;;  %v1742_v9 = vld [vmem:[%s1714_s11 + $0x80] sm:$0xff]  ;;  %v1745_v10 = vld [vmem:[%s1714_s11 + $0x10] sm:$0xff]  ;;  %v1755_v14 = vld [vmem:[%s1714_s11 + $0x28] sm:$0xff]  ;;  %v1243_v55 = vmul.f32 -1.442695, %v1726_v3  ;;  %s1264_s26 = sshll.u32 %s1625_s16, 12 }
  0x3b   : > { %v1267_v11 = vpack.c.bf16 %v1742_v9, %v1737_v7  ;;  %v1750_v12 = vld [vmem:[%s1714_s11 + $0x90] sm:$0xff]  ;;  %v1758_v15 = vld [vmem:[%s1714_s11 + $0xa8] sm:$0xff]  ;;  %v1763_v16 = vld [vmem:[%s2110_s1] sm:$0xff]  ;;  %v1229_v56 = vmul.f32 -1.442695, %v1729_v4  ;;  %1350 = vpow2.f32 %v1227_v54  ;;  %s1128_s27 = sshll.u32 %s1986_s22, 4  ;;  %s2059_s29 = scalar_lea.hbm %s2112_s3, %s1264_s26  ;;  %s2061_s27 = int_to_ptr.vmem [resolvable:$true] %s1128_s27 }
  0x3c   : > { %1266 = vmatprep.subr.bf16.mxu0 %v1265_v5  ;;  %1270 = vmatprep.subr.bf16.mxu1 %v1269_v8  ;;  %v1271_v13 = vpack.c.bf16 %v1750_v12, %v1745_v10  ;;  %v1273_v17 = vpack.c.bf16 %v1758_v15, %v1755_v14  ;;  %v1768_v18 = vld [vmem:[%s1714_s11 + $0x38] sm:$0xff]  ;;  %v1776_v21 = vld [vmem:[%s1714_s11 + $0x20] sm:$0xff]  ;;  %v1784_v24 = vld [vmem:[%s1714_s11 + $0x30] sm:$0xff]  ;;  %v1245_v57 = vmul.f32 -1.442695, %v1734_v6  ;;  %1352 = vpow2.f32 %v1243_v55  ;;  %s1115_s30 = scalar_lea.sflag [#allocation4], %s1708_s5 }
  0x3d   : > { %1268 = vmatpush1.bf16.msra.mxu0 %v1267_v11  ;;  %v1771_v19 = vld [vmem:[%s1714_s11 + $0xb8] sm:$0xff]  ;;  %v1779_v22 = vld [vmem:[%s1714_s11 + $0xa0] sm:$0xff]  ;;  %v1787_v25 = vld [vmem:[%s1714_s11 + $0xb0] sm:$0xff]  ;;  %v1226_v58 = vmul.f32 -1.442695, %v1737_v7  ;;  %1354 = vpow2.f32 %v1229_v56  ;;  %s1508_s9 = scalar_lea.vmem %s2061_s27, 4096 }
  0x3e   : > { %1272 = vmatpush1.bf16.msra.mxu1 %v1271_v13  ;;  %v1277_v20 = vpack.c.bf16 %v1771_v19, %v1768_v18  ;;  %1274 = vmatprep.subr.bf16.mxu0 %v1273_v17  ;;  %v1275_v23 = vpack.c.bf16 %v1779_v22, %v1776_v21  ;;  %v1279_v26 = vpack.c.bf16 %v1787_v25, %v1784_v24  ;;  %v1796_v27 = vld [vmem:[%s2110_s1 + $0x8] sm:$0xff]  ;;  %v1807_v30 = vld [vmem:[%s1714_s11 + $0x58] sm:$0xff]  ;;  %v1818_v34 = vld [vmem:[%s1714_s11 + $0x40] sm:$0xff]  ;;  %v1242_v59 = vmul.f32 -1.442695, %v1742_v9  ;;  %p1509_p6 = scmp.ne.s32.totalorder %s2061_s27, %s1508_s9  ;;  %p2119_p11 = scmp.ne.s32.totalorder %s2116_s24, 0 }
  0x3f   : > { %v1799_v28 = vld [vmem:[%s1714_s11 + $0x48] sm:$0xff]  ;;  %v1810_v31 = vld [vmem:[%s1714_s11 + $0xd8] sm:$0xff]  ;;  %v1821_v35 = vld [vmem:[%s1714_s11 + $0xc0] sm:$0xff]  ;;  %v1228_v60 = vmul.f32 -1.442695, %v1745_v10  ;;  %1356 = vpow2.f32 %v1245_v57  ;;  %s1581_s10 = smov [#allocation5]  }
  0x40   : > { %1210 = vmatmul.mubr.msk.f32.vlgmr.msra.gmra.mrb[0].mxu0 %vm235_vm0, %v1763_v16  ;;  %1278 = vmatprep.subr.bf16.mxu1 %v1277_v20  ;;  %v1804_v29 = vld [vmem:[%s1714_s11 + $0xc8] sm:$0xff]  ;;  %v1285_v33 = vpack.c.bf16 %v1810_v31, %v1807_v30  ;;  %v1825_v36 = vld [vmem:[%s1714_s11 + $0x50] sm:$0xff]  ;;  %v1283_v40 = vpack.c.bf16 %v1821_v35, %v1818_v34  ;;  %v1844_v41 = vld [vmem:[%s1714_s11 + $0x78] sm:$0xff]  ;;  %1358 = vpow2.f32 %v1226_v58  ;;  %v1244_v61 = vmul.f32 -1.442695, %v1750_v12  ;;  %p1510_p12 = pnand %p1509_p6, %p2119_p11 }
  0x41   : > { %1212 = vmatmul.mubr.msk.f32.vlgmr.msra.gmra.mrb[0].mxu1 %vm235_vm0, %v1763_v16  ;;  %1276 = vmatpush1.bf16.msra.mxu0 %v1275_v23  ;;  %v1281_v32 = vpack.c.bf16 %v1804_v29, %v1799_v28  ;;  %v1828_v37 = vld [vmem:[%s1714_s11 + $0xd0] sm:$0xff]  ;;  %v1833_v38 = vld [vmem:[%s1714_s11 + $0x68] sm:$0xff]  ;;  %v1847_v42 = vld [vmem:[%s1714_s11 + $0xf8] sm:$0xff]  ;;  %1360 = vpow2.f32 %v1242_v59  ;;  %v1231_v62 = vmul.f32 -1.442695, %v1755_v14 }
  0x42   : > { %1280 = vmatpush1.bf16.msra.mxu1 %v1279_v26  ;;  %312 = vmatprep.mubr.f32.mxu0 %v1579_v0  ;;  %v1836_v39 = vld [vmem:[%s1714_s11 + $0xe8] sm:$0xff]  ;;  %v1287_v43 = vpack.c.bf16 %v1828_v37, %v1825_v36  ;;  %v223_v45 = vld [vmem:[%s2111_s2] sm:$0xff]  ;;  %v1293_v46 = vpack.c.bf16 %v1847_v42, %v1844_v41  ;;  %v1872_v49 = vld [vmem:[%s1714_s11 + $0x70] sm:$0xff]  ;;  %1362 = vpow2.f32 %v1228_v60  ;;  %v1247_v63 = vmul.f32 -1.442695, %v1758_v15  ;;  %p1511_p13 = pneg %p1510_p12 }
  0x43   : > { %389 = vmatprep.mubr.f32.mxu1 %v1579_v0  ;;  %1282 = vmatprep.subr.bf16.mxu0 %v1281_v32  ;;  %v1289_v44 = vpack.c.bf16 %v1836_v39, %v1833_v38  ;;  %v1865_v47 = vld [vmem:[%s1714_s11 + $0x60] sm:$0xff]  ;;  %v1875_v50 = vld [vmem:[%s1714_s11 + $0xf0] sm:$0xff]  ;;  %v224_v51 = vld [vmem:[%s2111_s2 + $0x8] sm:$0xff]  ;;  %1364 = vpow2.f32 %v1244_v61  ;;  %v1230_v2 = vmul.f32 -1.442695, %v1776_v21 }
  0x44   : > { %1211 = vmatmul.mubr.msk.f32.gmra.mrb[2].mxu0 %vm235_vm0, %v1796_v27  ;;  %1286 = vmatprep.subr.bf16.mxu1 %v1285_v33  ;;  %v1868_v48 = vld [vmem:[%s1714_s11 + $0xe0] sm:$0xff]  ;;  %v1295_v53 = vpack.c.bf16 %v1875_v50, %v1872_v49  ;;  %1366 = vpow2.f32 %v1231_v62  ;;  %v1249_v5 = vmul.f32 -1.442695, %v1771_v19  ;;  %v1246_v19 = vmul.f32 -1.442695, %v1779_v22  ;;  %s1512_s11 = sshll.u32 %s1581_s10, 4  ;;  %s1513_s11 = int_to_ptr.vmem [resolvable:$false] %s1512_s11 }
  0x45   : > { %1213 = vmatmul.mubr.msk.f32.gmra.mrb[2].mxu1 %vm235_vm0, %v1796_v27  ;;  %460 = vmatprep.mubr.f32.mxu0 %v1579_v0  ;;  %v1291_v52 = vpack.c.bf16 %v1868_v48, %v1865_v47  ;;  %v1351_v1 = vpop.eup %1350  ;;  %1368 = vpow2.f32 %v1247_v63  ;;  %v1232_v26 = vmul.f32 -1.442695, %v1784_v24  ;;  %v1235_v24 = vmul.f32 -1.442695, %v1799_v28  ;;  %s1514_s23 = scalar_lea.vmem %s1513_s11, 8192  ;;  %p1515_p8 = scmp.lt.s32.totalorder %s2061_s27, %s1513_s11 }
  0x46   : > { %537 = vmatprep.mubr.f32.mxu1 %v1579_v0  ;;  %227 = vperm.xlu0 %1349, %v223_v45   ;;  %v1353_v3 = vpop.eup %1352  ;;  %v955_v7 = vadd.f32 1.0, %v1351_v1  ;;  %v1237_v54 = vmul.f32 -1.442695, %v1807_v30  ;;  %v1253_v55 = vmul.f32 -1.442695, %v1810_v31  ;;  %p1516_p10 = scmp.lt.s32.totalorder %s1514_s23, %s1508_s9 }
  0x47   : > { %v1355_v4 = vpop.eup %1354  ;;  %v971_v9 = vadd.f32 1.0, %v1353_v3  ;;  %v1234_v28 = vmul.f32 -1.442695, %v1818_v34  ;;  %v1250_v59 = vmul.f32 -1.442695, %v1821_v35 }
  0x48   : > { %1214 = vmatmul.mubr.msk.f32.vlgmr.msra.gmra.mrb[4].mxu0 %vm235_vm0, %v1763_v16  ;;  %v957_v11 = vadd.f32 1.0, %v1355_v4  ;;  %v1252_v60 = vmul.f32 -1.442695, %v1828_v37  ;;  %v1239_v61 = vmul.f32 -1.442695, %v1833_v38  ;;  %p1517_p0 = por %p1516_p10, %p1515_p8 }
  0x49   : > { %1216 = vmatmul.mubr.msk.f32.vlgmr.msra.gmra.mrb[4].mxu1 %vm235_vm0, %v1763_v16  ;;  %1284 = vmatpush1.bf16.msra.mxu0 %v1283_v40  ;;  %v1357_v6 = vpop.eup %1356  ;;  %v1238_v37 = vmul.f32 -1.442695, %v1865_v47  ;;  %v1240_v38 = vmul.f32 -1.442695, %v1872_v49  ;;  %v1241_v4 = vmul.f32 -1.442695, %v1844_v41 }
  0x4a   : > { %1288 = vmatpush1.bf16.msra.mxu1 %v1287_v43  ;;  %466 = vmatprep.mubr.f32.mxu0 %v1579_v0  ;;  %v1359_v8 = vpop.eup %1358  ;;  %v973_v13 = vadd.f32 1.0, %v1357_v6  ;;  %v1256_v47 = vmul.f32 -1.442695, %v1875_v50  ;;  %v1257_v49 = vmul.f32 -1.442695, %v1847_v42  ;;  %p1518_p2 = pnand %p1517_p0, %p1511_p13 }
  0x4b   : > { %543 = vmatprep.mubr.f32.mxu1 %v1579_v0  ;;  %1290 = vmatprep.subr.bf16.mxu0 %v1289_v44  ;;  %v1361_v10 = vpop.eup %1360  ;;  %v954_v14 = vadd.f32 1.0, %v1359_v8  ;;  %v1248_v44 = vmul.f32 -1.442695, %v1787_v25  ;;  %v1254_v8 = vmul.f32 -1.442695, %v1868_v48 }
  0x4c   : > { %1215 = vmatmul.mubr.msk.f32.gmra.mrb[6].mxu0 %vm235_vm0, %v1796_v27  ;;  %1294 = vmatprep.subr.bf16.mxu1 %v1293_v46  ;;  %v1363_v12 = vpop.eup %1362 }
  0x4d   : > { %1217 = vmatmul.mubr.msk.f32.gmra.mrb[6].mxu1 %vm235_vm0, %v1796_v27  ;;  %614 = vmatprep.mubr.f32.mxu0 %v1579_v0  ;;  %v1365_v15 = vpop.eup %1364  ;;  %v956_v17 = vadd.f32 1.0, %v1363_v12 }
  0x4e   : > { %691 = vmatprep.mubr.f32.mxu1 %v1579_v0  ;;  %232 = vperm.xlu0 %1349, %v224_v51   ;;  %v972_v21 = vadd.f32 1.0, %v1365_v15 }
  0x50   : > { %1218 = vmatmul.mubr.msk.f32.vlgmr.msra.gmra.mrb[8].mxu0 %vm235_vm0, %v1763_v16 }
  0x51   : > { %1220 = vmatmul.mubr.msk.f32.vlgmr.msra.gmra.mrb[8].mxu1 %vm235_vm0, %v1763_v16  ;;  %1292 = vmatpush1.bf16.msra.mxu0 %v1291_v52  ;;  %v1251_v52 = vmul.f32 -1.442695, %v1804_v29  ;;  %v1236_v29 = vmul.f32 -1.442695, %v1825_v36  ;;  %v1255_v36 = vmul.f32 -1.442695, %v1836_v39 }
  0x52   : > { %1296 = vmatpush1.bf16.msra.mxu1 %v1295_v53  ;;  %620 = vmatprep.mubr.f32.mxu0 %v1579_v0 }
  0x53   : > { %697 = vmatprep.mubr.f32.mxu1 %v1579_v0 }
  0x54   : > { %1219 = vmatmul.mubr.msk.f32.gmra.mrb[10].mxu0 %vm235_vm0, %v1796_v27 }
  0x55   : > { %1221 = vmatmul.mubr.msk.f32.gmra.mrb[10].mxu1 %vm235_vm0, %v1796_v27  ;;  %768 = vmatprep.mubr.f32.mxu0 %v1579_v0 }
  0x56   : > { %845 = vmatprep.mubr.f32.mxu1 %v1579_v0 }
  0x58   : > { %1222 = vmatmul.mubr.msk.f32.vlgmr.msra.gmra.mrb[12].mxu0 %vm235_vm0, %v1763_v16 }
  0x59   : > { %1224 = vmatmul.mubr.msk.f32.vlgmr.msra.gmra.mrb[12].mxu1 %vm235_vm0, %v1763_v16  ;;  %774 = vmatprep.mubr.f32.mxu0 %v1579_v0  ;;  %v970_v16 = vadd.f32 1.0, %v1361_v10 }
  0x5a   : > { %851 = vmatprep.mubr.f32.mxu1 %v1579_v0  ;;  %v1233_v0 = vmul.f32 -1.442695, %v1768_v18  ;;  %v1367_v18 = vpop.eup %1366 }
  0x5b   : > { %v1369_v20 = vpop.eup %1368 }
  0x5c   : > { %1223 = vmatmul.mubr.msk.f32.gmra.mrb[14].mxu0 %vm235_vm0, %v1796_v27  ;;  %1370 = vpow2.f32 %v1233_v0  ;;  %v975_v33 = vadd.f32 1.0, %v1369_v20 }
  0x5d   : > { %1225 = vmatmul.mubr.msk.f32.gmra.mrb[14].mxu1 %vm235_vm0, %v1796_v27  ;;  %1372 = vpow2.f32 %v1230_v2  ;;  %v959_v27 = vadd.f32 1.0, %v1367_v18 }
  0x5e   : > { %1374 = vpow2.f32 %v1249_v5 }
  0x5f   : > { %1376 = vrcp.f32 %v955_v7 }
  0x60   : > { %1378 = vrcp.f32 %v971_v9 }
  0x61   : > { %1380 = vrcp.f32 %v957_v11 }
  0x62   : > { %1382 = vrcp.f32 %v973_v13 }
  0x63   : > { %1384 = vrcp.f32 %v954_v14 }
  0x64   : > { %1386 = vrcp.f32 %v970_v16 }
  0x65   : > { %1388 = vrcp.f32 %v956_v17 }
  0x66   : > { %v1371_v23 = vpop.eup %1370  ;;  %1390 = vpow2.f32 %v1246_v19 }
  0x67   : > { %v1373_v32 = vpop.eup %1372  ;;  %1392 = vrcp.f32 %v972_v21  ;;  %v961_v40 = vadd.f32 1.0, %v1371_v23 }
  0x68   : > { %v1927_v43 = vpop.eup %1374  ;;  %1394 = vpow2.f32 %v1232_v26  ;;  %v958_v45 = vadd.f32 1.0, %v1373_v32 }
  0x69   : > { %v1930_v22 = vpop.eup %1376  ;;  %1396 = vrcp.f32 %v959_v27  ;;  %v977_v41 = vadd.f32 1.0, %v1927_v43 }
  0x6a   : > { %v1932_v46 = vpop.eup %1378  ;;  %1398 = vrcp.f32 %v975_v33 }
  0x6b   : > { %v1935_v51 = vpop.eup %1380  ;;  %1400 = vrcp.f32 %v961_v40 }
  0x6c   : > { %v1938_v53 = vpop.eup %1382  ;;  %1402 = vpow2.f32 %v1248_v44 }
  0x6d   : > { %v1941_v25 = vpop.eup %1384  ;;  %1404 = vrcp.f32 %v958_v45 }
  0x6e   : > { %v1944_v56 = vpop.eup %1386  ;;  %1406 = vpow2.f32 %v1235_v24 }
  0x6f   : > { %v1947_v57 = vpop.eup %1388  ;;  %1408 = vpow2.f32 %v1251_v52 }
  0x70   : > { %v1391_v58 = vpop.eup %1390  ;;  %1410 = vpow2.f32 %v1237_v54 }
  0x71   : > { %v1951_v30 = vpop.eup %1392  ;;  %1412 = vpow2.f32 %v1253_v55  ;;  %v974_v34 = vadd.f32 1.0, %v1391_v58 }
  0x72   : > { %v1395_v31 = vpop.eup %1394  ;;  %1414 = vpow2.f32 %v1234_v28 }
  0x73   : > { %v1955_v62 = vpop.eup %1396  ;;  %1416 = vpow2.f32 %v1236_v29  ;;  %v960_v35 = vadd.f32 1.0, %v1395_v31 }
  0x74   : > { %v1957_v63 = vpop.eup %1398  ;;  %1418 = vpow2.f32 %v1250_v59 }
  0x75   : > { %v1960_v0 = vpop.eup %1400  ;;  %1420 = vpow2.f32 %v1252_v60 }
  0x76   : > { %v1403_v1 = vpop.eup %1402  ;;  %1422 = vpow2.f32 %v1239_v61 }
  0x77   : > { %v1963_v2 = vpop.eup %1404  ;;  %1424 = vrcp.f32 %v974_v34  ;;  %v976_v6 = vadd.f32 1.0, %v1403_v1 }
  0x78   : > { %v1407_v3 = vpop.eup %1406  ;;  %1426 = vpow2.f32 %v1255_v36 }
  0x79   : > { %v1409_v5 = vpop.eup %1408  ;;  %1428 = vrcp.f32 %v960_v35  ;;  %v963_v14 = vadd.f32 1.0, %v1407_v3 }
  0x7a   : > { %v1411_v7 = vpop.eup %1410  ;;  %1430 = vpow2.f32 %v1238_v37  ;;  %v979_v24 = vadd.f32 1.0, %v1409_v5 }
  0x7b   : > { %v1413_v9 = vpop.eup %1412  ;;  %1432 = vpow2.f32 %v1240_v38  ;;  %v965_v33 = vadd.f32 1.0, %v1411_v7 }
  0x7c   : > { %v1415_v10 = vpop.eup %1414  ;;  %1434 = vpow2.f32 %v1241_v4  ;;  %v981_v34 = vadd.f32 1.0, %v1413_v9 }
  0x7d   : > { %v1417_v11 = vpop.eup %1416  ;;  %1436 = vrcp.f32 %v976_v6  ;;  %v962_v18 = vadd.f32 1.0, %v1415_v10 }
  0x7e   : > { %v1419_v13 = vpop.eup %1418  ;;  %1438 = vpow2.f32 %v1254_v8  ;;  %v964_v23 = vadd.f32 1.0, %v1417_v11 }
  0x7f   : > { %v1421_v17 = vpop.eup %1420  ;;  %1440 = vpow2.f32 %v1256_v47 }
  0x80   : > { %v1423_v21 = vpop.eup %1422  ;;  %1442 = vpow2.f32 %v1257_v49  ;;  %v980_v60 = vadd.f32 1.0, %v1421_v17 }
  0x81   : > { %v1980_v32 = vpop.eup %1424  ;;  %1444 = vrcp.f32 %v977_v41  ;;  %v967_v38 = vadd.f32 1.0, %v1423_v21 }
  0x82   : > { %v1427_v45 = vpop.eup %1426  ;;  %1446 = vrcp.f32 %v963_v14 }
  0x83   : > { %v1429_v28 = vpop.eup %1428  ;;  %1448 = vrcp.f32 %v962_v18 }
  0x84   : > { %v1431_v59 = vpop.eup %1430  ;;  %1450 = vrcp.f32 %v964_v23 }
  0x85   : > { %v1433_v61 = vpop.eup %1432  ;;  %1452 = vrcp.f32 %v965_v33  ;;  %v966_v7 = vadd.f32 1.0, %v1431_v59 }
  0x86   : > { %v1435_v37 = vpop.eup %1434  ;;  %1454 = vrcp.f32 %v979_v24  ;;  %v968_v47 = vadd.f32 1.0, %v1433_v61 }
  0x87   : > { %v1437_v6 = vpop.eup %1436  ;;  %v969_v11 = vadd.f32 1.0, %v1435_v37 }
  0x88   : > { %v1439_v9 = vpop.eup %1438 }
  0x89   : > { %v1441_v49 = vpop.eup %1440 }
  0x8a   : > { %v1443_v14 = vpop.eup %1442  ;;  %v984_v23 = vadd.f32 1.0, %v1441_v49 }
  0x8b   : > { %v1445_v18 = vpop.eup %1444  ;;  %v985_v33 = vadd.f32 1.0, %v1443_v14 }
  0x8c   : > { %v1447_v21 = vpop.eup %1446 }
  0xc5   : > { %v1967_v39 = vpop.permute.xlu0 %227 }
  0xcd   : > { %v1976_v20 = vpop.permute.xlu0 %232 }
 0x113   : > { %v308_v12 = vpop.f32.mrb[0].mxu0 }
 0x114   : > { %v385_v15 = vpop.f32.mrb[0].mxu1  ;;  %v309_v16 = vadd.f32 %v308_v12, %v1967_v39  ;;  %v310_v48 = vpop.f32.mrb[1].mxu0 }
 0x115   : > { %v386_v50 = vadd.f32 %v385_v15, %v1967_v39  ;;  %v311_v19 = vadd.f32 %v310_v48, %v1967_v39  ;;  %v387_v42 = vpop.f32.mrb[1].mxu1  ;;  %v983_v15 = vadd.f32 1.0, %v1427_v45 }
 0x116   : > { %v1050_v26 = vmul.f32 %v1941_v25, %v309_v16  ;;  %v388_v27 = vadd.f32 %v387_v42, %v1967_v39 }
 0x117   : > { %v1052_v40 = vmul.f32 %v1947_v57, %v386_v50  ;;  %v1051_v43 = vmul.f32 %v1930_v22, %v311_v19  ;;  %v314_v44 = vpop.f32.mrb[2].mxu0  ;;  %v978_v22 = vadd.f32 1.0, %v1419_v13  ;;  %v982_v50 = vadd.f32 1.0, %v1439_v9 }
 0x118   : > { %1082 = vst [vmem:[%s1986_s22] sm:$0xff] %v1050_v26  ;;  %v1053_v52 = vmul.f32 %v1935_v51, %v388_v27  ;;  %v391_v54 = vpop.f32.mrb[2].mxu1  ;;  %v315_v25 = vadd.f32 %v314_v44, %v1976_v20  ;;  %v316_v55 = vpop.f32.mrb[3].mxu0 }
 0x119   : > { %1084 = vst [vmem:[%s1986_s22 + $0x10] sm:$0xff] %v1052_v40  ;;  %1083 = vst [vmem:[%s1986_s22 + $0x8] sm:$0xff] %v1051_v43  ;;  %v392_v57 = vadd.f32 %v391_v54, %v1976_v20  ;;  %v317_v29 = vadd.f32 %v316_v55, %v1976_v20  ;;  %v393_v58 = vpop.f32.mrb[3].mxu1  ;;  %1456 = vrcp.f32 %v978_v22  ;;  %v1449_v27 = vpop.eup %1448 }
 0x11a   : > { %1085 = vst [vmem:[%s1986_s22 + $0x18] sm:$0xff] %v1053_v52  ;;  %v1066_v51 = vmul.f32 %v1944_v56, %v315_v25  ;;  %v394_v31 = vadd.f32 %v393_v58, %v1976_v20  ;;  %1458 = vrcp.f32 %v980_v60  ;;  %v1451_v45 = vpop.eup %1450 }
 0x11b   : > { %v1068_v36 = vmul.f32 %v1951_v30, %v392_v57  ;;  %v1067_v35 = vmul.f32 %v1932_v46, %v317_v29  ;;  %v462_v1 = vpop.f32.mrb[4].mxu0  ;;  %1460 = vrcp.f32 %v981_v34  ;;  %v1453_v25 = vpop.eup %1452 }
 0x11c   : > { %1098 = vst [vmem:[%s1986_s22 + $0x80] sm:$0xff] %v1066_v51  ;;  %v1069_v3 = vmul.f32 %v1938_v53, %v394_v31  ;;  %v463_v56 = vadd.f32 %v462_v1, %v1967_v39  ;;  %v539_v4 = vpop.f32.mrb[4].mxu1  ;;  %v464_v5 = vpop.f32.mrb[5].mxu0  ;;  %1462 = vrcp.f32 %v967_v38 }
 0x11d   : > { %1100 = vst [vmem:[%s1986_s22 + $0x90] sm:$0xff] %v1068_v36  ;;  %1099 = vst [vmem:[%s1986_s22 + $0x88] sm:$0xff] %v1067_v35  ;;  %v540_v30 = vadd.f32 %v539_v4, %v1967_v39  ;;  %v465_v46 = vadd.f32 %v464_v5, %v1967_v39  ;;  %v541_v8 = vpop.f32.mrb[5].mxu1  ;;  %1464 = vrcp.f32 %v966_v7  ;;  %v1455_v22 = vpop.eup %1454 }
 0x11e   : > { %1101 = vst [vmem:[%s1986_s22 + $0x98] sm:$0xff] %v1069_v3  ;;  %v1054_v53 = vmul.f32 %v1963_v2, %v463_v56  ;;  %v542_v10 = vadd.f32 %v541_v8, %v1967_v39  ;;  %1466 = vrcp.f32 %v968_v47 }
 0x11f   : > { %v1056_v41 = vmul.f32 %v1429_v28, %v540_v30  ;;  %v1055_v12 = vmul.f32 %v1955_v62, %v465_v46  ;;  %v468_v13 = vpop.f32.mrb[6].mxu0  ;;  %1468 = vrcp.f32 %v969_v11 }
 0x120   : > { %1086 = vst [vmem:[%s1986_s22 + $0x20] sm:$0xff] %v1054_v53  ;;  %v1057_v16 = vmul.f32 %v1960_v0, %v542_v10  ;;  %v469_v2 = vadd.f32 %v468_v13, %v1976_v20  ;;  %v545_v48 = vpop.f32.mrb[6].mxu1  ;;  %v470_v17 = vpop.f32.mrb[7].mxu0  ;;  %1470 = vrcp.f32 %v983_v15 }
 0x121   : > { %1088 = vst [vmem:[%s1986_s22 + $0x30] sm:$0xff] %v1056_v41  ;;  %1087 = vst [vmem:[%s1986_s22 + $0x28] sm:$0xff] %v1055_v12  ;;  %v546_v19 = vadd.f32 %v545_v48, %v1976_v20  ;;  %v471_v62 = vadd.f32 %v470_v17, %v1976_v20  ;;  %v547_v42 = vpop.f32.mrb[7].mxu1  ;;  %1472 = vrcp.f32 %v982_v50 }
 0x122   : > { %1089 = vst [vmem:[%s1986_s22 + $0x38] sm:$0xff] %v1057_v16  ;;  %v1070_v0 = vmul.f32 %v1980_v32, %v469_v2  ;;  %v548_v26 = vadd.f32 %v547_v42, %v1976_v20  ;;  %1474 = vrcp.f32 %v984_v23 }
 0x123   : > { %v1072_v40 = vmul.f32 %v1437_v6, %v546_v19  ;;  %v1071_v43 = vmul.f32 %v1957_v63, %v471_v62  ;;  %v616_v44 = vpop.f32.mrb[8].mxu0  ;;  %v1457_v58 = vpop.eup %1456  ;;  %1476 = vrcp.f32 %v985_v33 }
 0x124   : > { %1102 = vst [vmem:[%s1986_s22 + $0xa0] sm:$0xff] %v1070_v0  ;;  %v1073_v24 = vmul.f32 %v1445_v18, %v548_v26  ;;  %v617_v52 = vadd.f32 %v616_v44, %v1967_v39  ;;  %v693_v54 = vpop.f32.mrb[8].mxu1  ;;  %v618_v32 = vpop.f32.mrb[9].mxu0 }
 0x125   : > { %1104 = vst [vmem:[%s1986_s22 + $0xb0] sm:$0xff] %v1072_v40  ;;  %1103 = vst [vmem:[%s1986_s22 + $0xa8] sm:$0xff] %v1071_v43  ;;  %v694_v55 = vadd.f32 %v693_v54, %v1967_v39  ;;  %v619_v28 = vadd.f32 %v618_v32, %v1967_v39  ;;  %v695_v63 = vpop.f32.mrb[9].mxu1  ;;  %v1459_v31 = vpop.eup %1458 }
 0x126   : > { %1105 = vst [vmem:[%s1986_s22 + $0xb8] sm:$0xff] %v1073_v24  ;;  %v1058_v57 = vmul.f32 %v1449_v27, %v617_v52  ;;  %v696_v29 = vadd.f32 %v695_v63, %v1967_v39  ;;  %v1461_v1 = vpop.eup %1460 }
 0x127   : > { %v1060_v59 = vmul.f32 %v1451_v45, %v694_v55  ;;  %v1059_v60 = vmul.f32 %v1447_v21, %v619_v28  ;;  %v622_v51 = vpop.f32.mrb[10].mxu0  ;;  %v1463_v56 = vpop.eup %1462 }
 0x128   : > { %1090 = vst [vmem:[%s1986_s22 + $0x40] sm:$0xff] %v1058_v57  ;;  %v1061_v61 = vmul.f32 %v1453_v25, %v696_v29  ;;  %v623_v34 = vadd.f32 %v622_v51, %v1976_v20  ;;  %v699_v36 = vpop.f32.mrb[10].mxu1  ;;  %v624_v35 = vpop.f32.mrb[11].mxu0 }
 0x129   : > { %1092 = vst [vmem:[%s1986_s22 + $0x50] sm:$0xff] %v1060_v59  ;;  %1091 = vst [vmem:[%s1986_s22 + $0x48] sm:$0xff] %v1059_v60  ;;  %v700_v37 = vadd.f32 %v699_v36, %v1976_v20  ;;  %v625_v38 = vadd.f32 %v624_v35, %v1976_v20  ;;  %v701_v3 = vpop.f32.mrb[11].mxu1  ;;  %v1465_v6 = vpop.eup %1464 }
 0x12a   : > { %1093 = vst [vmem:[%s1986_s22 + $0x58] sm:$0xff] %v1061_v61  ;;  %v1074_v4 = vmul.f32 %v1457_v58, %v623_v34  ;;  %v702_v5 = vadd.f32 %v701_v3, %v1976_v20  ;;  %v1467_v8 = vpop.eup %1466 }
 0x12b   : > { %v1076_v7 = vmul.f32 %v1459_v31, %v700_v37  ;;  %v1075_v30 = vmul.f32 %v1455_v22, %v625_v38  ;;  %v770_v46 = vpop.f32.mrb[12].mxu0  ;;  %v1469_v49 = vpop.eup %1468 }
 0x12c   : > { %1106 = vst [vmem:[%s1986_s22 + $0xc0] sm:$0xff] %v1074_v4  ;;  %v1077_v9 = vmul.f32 %v1461_v1, %v702_v5  ;;  %v771_v47 = vadd.f32 %v770_v46, %v1967_v39  ;;  %v847_v53 = vpop.f32.mrb[12].mxu1  ;;  %v772_v10 = vpop.f32.mrb[13].mxu0 }
 0x12d   : > { %1108 = vst [vmem:[%s1986_s22 + $0xd0] sm:$0xff] %v1076_v7  ;;  %1107 = vst [vmem:[%s1986_s22 + $0xc8] sm:$0xff] %v1075_v30  ;;  %v848_v11 = vadd.f32 %v847_v53, %v1967_v39  ;;  %v773_v41 = vadd.f32 %v772_v10, %v1967_v39  ;;  %v849_v12 = vpop.f32.mrb[13].mxu1  ;;  %v1471_v13 = vpop.eup %1470 }
 0x12e   : > { %1109 = vst [vmem:[%s1986_s22 + $0xd8] sm:$0xff] %v1077_v9  ;;  %v1062_v14 = vmul.f32 %v1465_v6, %v771_v47  ;;  %v850_v15 = vadd.f32 %v849_v12, %v1967_v39  ;;  %v1473_v16 = vpop.eup %1472 }
 0x12f   : > { %v1064_v2 = vmul.f32 %v1467_v8, %v848_v11  ;;  %v1063_v48 = vmul.f32 %v1463_v56, %v773_v41  ;;  %v776_v17 = vpop.f32.mrb[14].mxu0  ;;  %v1475_v18 = vpop.eup %1474 }
 0x130   : > { %1094 = vst [vmem:[%s1986_s22 + $0x60] sm:$0xff] %v1062_v14  ;;  %v1065_v50 = vmul.f32 %v1469_v49, %v850_v15  ;;  %v777_v19 = vadd.f32 %v776_v17, %v1976_v20  ;;  %v853_v62 = vpop.f32.mrb[14].mxu1  ;;  %v778_v42 = vpop.f32.mrb[15].mxu0 }
 0x131   : > { %v1477_v21 = vpop.eup %1476  ;;  %1096 = vst [vmem:[%s1986_s22 + $0x70] sm:$0xff] %v1064_v2  ;;  %1095 = vst [vmem:[%s1986_s22 + $0x68] sm:$0xff] %v1063_v48  ;;  %v854_v39 = vadd.f32 %v853_v62, %v1976_v20  ;;  %v779_v23 = vadd.f32 %v778_v42, %v1976_v20  ;;  %v855_v0 = vpop.f32.mrb[15].mxu1 }
 0x132   : > { %1097 = vst [vmem:[%s1986_s22 + $0x78] sm:$0xff] %v1065_v50  ;;  %v1078_v26 = vmul.f32 %v1473_v16, %v777_v19  ;;  %v856_v27 = vadd.f32 %v855_v0, %v1976_v20 }
 0x133   : > { %v1080_v33 = vmul.f32 %v1475_v18, %v854_v39  ;;  %v1079_v40 = vmul.f32 %v1471_v13, %v779_v23 }
 0x134   : > { %1110 = vst [vmem:[%s1986_s22 + $0xe0] sm:$0xff] %v1078_v26  ;;  %v1081_v43 = vmul.f32 %v1477_v21, %v856_v27 }
 0x135   : > { %1112 = vst [vmem:[%s1986_s22 + $0xf0] sm:$0xff] %v1080_v33  ;;  %1111 = vst [vmem:[%s1986_s22 + $0xe8] sm:$0xff] %v1079_v40 }
 0x136   : > { %1113 = vst [vmem:[%s1986_s22 + $0xf8] sm:$0xff] %v1081_v43 }
 0x137   : > { %1521 = shalt.err (!%p1518_p2)
}
 0x138   : > { %s1522_s4 = scalar_lea.hbm %s2059_s29, 4096  ;;  %s1526_s8 = scalar_lea.hbm %s2112_s3, 8192 }
 0x139   : > { %p1523_p4 = scmp.ne.s32.totalorder %s2059_s29, %s1522_s4  ;;  %p1527_p9 = scmp.lt.u32.totalorder %s2059_s29, %s2112_s3 }
 0x13a   : > { %p1528_p1 = scmp.lt.u32.totalorder %s1526_s8, %s1522_s4  ;;  %p1530_p6 = scmp.lt.u32.totalorder %s1522_s4, %s2059_s29 }
 0x13b   : > { %p1524_p5 = pnand %p1523_p4, %p2119_p11 }
 0x13c   : > { %p1529_p3 = por %p1528_p1, %p1527_p9 }
 0x13d   : > { %p1525_p7 = pneg %p1524_p5 }
 0x13e   : > { %p1531_p12 = por %p1530_p6, %p1529_p3 }
 0x140   : > { %p1532_p13 = pnand %p1531_p12, %p1525_p7 }
 0x142   : > { %1535 = shalt.err (!%p1532_p13)
}
 0x143   : > { %s1582_s20 = smov 2048   ;;  %s1583_s22 = smov 128  }
 0x144   : > { %1299 = dma.vmem_to_hbm [thread:$0]  (%p2119_p11), %s2061_s27, 4096, %s2059_s29, %s1115_s30, %s1582_s20, %s1582_s20, %s1583_s22  }
 0x145 PF: > { %s1143_s26 = sand.u32 1, %s1562_s12   ;;  %p2120_p8 = scmp.ne.s32.totalorder %s2117_s25, 0 }
 0x146   : > { %p2121_p10 = scmp.ge.s32.totalorder %s1574_s15, 2  ;;  %s1144_s16 = scalar_lea.sflag [#allocation4], %s1143_s26 }
 0x148   : > { %p1306_p0 = pnand %p2121_p10, %p2120_p8 }
 0x14a   : > { %1557 = dma.done.wait (!%p1306_p0), %s1144_s16, 4096  }
 0x14b   : > { %1559 = vsyncadd (!%p1306_p0), %s1144_s16, 4294963200  ;;  %p16_p2 = scmp.ge.s32.totalorder %s1629_s18, 4   ;;  %s2122_s12 = smov %s1566_s13 }
 0x14c   : > { %s2123_s13 = smov %s1570_s14  ;;  %s2124_s14 = smov %s1641_s21 }
 0x14d   : > { %s2125_s15 = smov %s1629_s18  ;;  %18 = sbr.rel (!%p16_p2) target bundleno = 5 (0x5), region = 77 }
 0x154   :  { %1149 = vsyncpa [#allocation3], 1 }
 0x155   :  { %1151 = vsyncpa [#allocation3 + $0x1], 1 }
 0x156   :  { %1152 = vsyncpa [#allocation4], 1 }
 0x157   :  { %1154 = vsyncpa [#allocation4 + $0x1], 1 }

</bundles_post_ra>
